<compile_context>
chip_gen: v7x
topology: tpu7x:2x2x1
jax: 0.10.0
libtpu: 0.0.40
codegen_flags: <defaults>
</compile_context>

<pallas_src>
import functools

import jax
import jax.numpy as jnp
from jax.experimental import pallas as pl
from jax.experimental.pallas import tpu as pltpu

_MAX_TILE_ROWS = 512  # packed rows per grid step: 5 arrays * 2 buffers * 256 KiB << 16 MiB scoped VMEM


def _gumbel_softmax_kernel(alpha_ref, u_ref, *out_refs,
                           temp, hard, eps, n_class, n_seg, on_tpu):
    """One (tile_rows, L) tile, L = n_seg * n_class.

    Each row packs `n_seg` independent rows of the original [B, n_class]
    problem along the lane axis; all reductions below are per contiguous
    segment of `n_class` lanes.
    """
    a = alpha_ref[...].astype(jnp.float32)
    u = u_ref[...].astype(jnp.float32)
    tr, L = a.shape
    C = n_class

    lane = jax.lax.broadcasted_iota(jnp.int32, (tr, L), 1)
    seg_i = lane // C                                   # segment id per lane
    cls_f = (lane - seg_i * C).astype(jnp.float32)      # class id within segment

    if n_seg == 1:
        # not lane-packed: a segment is the whole row
        seg_max = lambda x: jnp.max(x, axis=-1, keepdims=True)
        seg_min = lambda x: jnp.min(x, axis=-1, keepdims=True)
        seg_sum = lambda x: jnp.sum(x, axis=-1, keepdims=True)
    elif on_tpu:
        # Masked bidirectional roll-trees: after ceil(log2(C)) doubling steps every
        # lane holds the max/min over its own C-lane segment.  Masks are built by
        # rolling the segment-id map with the same shifts as the data, so they are
        # correct regardless of the roll direction convention.
        seg_f = seg_i.astype(jnp.float32)
        shifts = []
        s = 1
        while s < C:
            shifts.append(s)
            s *= 2
        masks = [(pltpu.roll(seg_f, L - s, axis=-1) == seg_f,
                  pltpu.roll(seg_f, s, axis=-1) == seg_f) for s in shifts]

        def _tree(x, op, pad):
            r = x
            for s, (ok_a, ok_b) in zip(shifts, masks):
                ra = pltpu.roll(r, L - s, axis=-1)
                rb = pltpu.roll(r, s, axis=-1)
                r = op(r, jnp.where(ok_a, ra, pad))
                r = op(r, jnp.where(ok_b, rb, pad))
            return r

        seg_max = lambda x: _tree(x, jnp.maximum, -jnp.inf)
        seg_min = lambda x: _tree(x, jnp.minimum, jnp.float32(C))
        # Segment sums on the otherwise-idle MXU: block-diagonal ones matrix.
        mi = jax.lax.broadcasted_iota(jnp.int32, (L, L), 0) // C
        mj = jax.lax.broadcasted_iota(jnp.int32, (L, L), 1) // C
        seg_mat = (mi == mj).astype(jnp.float32)
        seg_sum = lambda x: jnp.dot(x, seg_mat, preferred_element_type=jnp.float32)
    else:
        # non-TPU / interpret fallback: plain reshape-based segment reductions
        def _b(m):
            return jnp.broadcast_to(m, (tr, n_seg, C)).reshape(tr, L)
        seg_max = lambda x: _b(jnp.max(x.reshape(tr, n_seg, C), -1, keepdims=True))
        seg_min = lambda x: _b(jnp.min(x.reshape(tr, n_seg, C), -1, keepdims=True))
        seg_sum = lambda x: _b(jnp.sum(x.reshape(tr, n_seg, C), -1, keepdims=True))

    recip = ((lambda v: pl.reciprocal(v, approx=True)) if on_tpu
             else (lambda v: 1.0 / v))

    # --- Gumbel(0,1) noise from the uniform samples ---------------------------
    g = -jnp.log(eps - jnp.log(u + eps))

    # --- soft Gumbel-Softmax sample (stable softmax; the max is subtracted once,
    #     no redundant second max) ----------------------------------------------
    z = (a + g) * (1.0 / temp)
    z_max = seg_max(z)
    e = jnp.exp(z - z_max)
    sg = e * recip(seg_sum(e))
    sg = jnp.maximum(sg, eps)

    # --- plain softmax of the logits -------------------------------------------
    ea = jnp.exp(a - seg_max(a))
    sm = ea * recip(seg_sum(ea))

    if hard:
        y_ref, sg_ref, s_ref = out_refs
        # Per-segment argmax (first index wins on ties), computed on z so it does
        # not depend on the exp / reciprocal chain.
        cand = jnp.where(z == z_max, cls_f, jnp.float32(C))
        first = seg_min(cand)
        y_hard = (cls_f == first).astype(jnp.float32)
        # TODO(synk): the straight-through gradient (y_hard - sg.detach() + sg) needs a
        # wrapper-level jax.custom_vjp; the forward value is identical to y_hard.
        y_ref[...] = y_hard.astype(y_ref.dtype)
    else:
        sg_ref, s_ref = out_refs  # y == sg when hard=False; skip the duplicate write

    sg_ref[...] = sg.astype(sg_ref.dtype)
    s_ref[...] = sm.astype(s_ref.dtype)


def gumbel_softmax_forward(alpha, key, *, temp=1.0, hard=False, eps=1e-10):
    """Pallas implementation of GumbelSoftmax.forward.

    alpha: [B, n_class] float32 logits (class axis last).
    key:   jax.random key for the uniform noise (replaces torch's global RNG).
    hard:  False -> training path, True -> eval / force_hard path.
    Returns (y, soft_samples_gumble, soft_samples), each [B, n_class] float32.
    """
    if not temp:
        temp = 1.0
    B, C = alpha.shape
    alpha = alpha.astype(jnp.float32)
    on_tpu = jax.default_backend() == "tpu"

    # Lane packing: n_seg original rows per 128-lane vreg row.
    n_seg = 128 // C if (C < 128 and 128 % C == 0) else 1
    L = n_seg * C
    pad = (-B) % n_seg
    alpha_p = jnp.pad(alpha, ((0, pad), (0, 0))) if pad else alpha
    R = (B + pad) // n_seg
    alpha_p = alpha_p.reshape(R, L)

    # Uniform(0,1) noise drawn outside the kernel: deterministic in `key` and
    # independent of the tiling (no per-tile PRNG seeding issues).
    u = jax.random.uniform(key, (R, L), dtype=jnp.float32)

    # Row tiling over the packed batch axis (double-buffered pipelining).
    tile_r = R if R <= _MAX_TILE_ROWS else _MAX_TILE_ROWS
    grid = (pl.cdiv(R, tile_r),)
    blk = pl.BlockSpec((tile_r, L), lambda i: (i, 0))

    n_out = 3 if hard else 2
    kernel = functools.partial(
        _gumbel_softmax_kernel, temp=float(temp), hard=bool(hard),
        eps=float(eps), n_class=C, n_seg=n_seg, on_tpu=on_tpu)

    extra = {}
    if on_tpu:
        extra["compiler_params"] = pltpu.CompilerParams(
            dimension_semantics=("parallel",),       # shard row tiles across v7x's 2 TCs
            vmem_limit_bytes=32 * 1024 * 1024)       # explicit headroom on all generations

    outs = pl.pallas_call(
        kernel,
        out_shape=tuple(jax.ShapeDtypeStruct((R, L), jnp.float32)
                        for _ in range(n_out)),
        grid=grid,
        in_specs=[blk, blk],
        out_specs=tuple(blk for _ in range(n_out)),
        **extra,
    )(alpha_p, u)

    def unpack(x):
        return x.reshape(R * n_seg, C)[:B]

    if hard:
        y, sg, s = (unpack(o) for o in outs)
    else:
        sg, s = (unpack(o) for o in outs)
        y = sg                       # bit-identical to sg; one fewer full-size HBM write
    return y, sg, s


if __name__ == "__main__":
    root = jax.random.PRNGKey(0)
    k_alpha, k_noise, k_alpha2 = jax.random.split(root, 3)

    B, C = 8, 16                      # [batch_size, n_class]
    alpha = jax.random.normal(k_alpha, (B, C), dtype=jnp.float32)

    # training path (hard=False): y is the soft Gumbel-Softmax sample
    y_soft, sg_soft, s_soft = gumbel_softmax_forward(alpha, k_noise, temp=1.0, hard=False)
    # eval / force_hard path (hard=True): y is one-hot
    y_hard, sg_hard, s_hard = gumbel_softmax_forward(alpha, k_noise, temp=1.0, hard=True)

    # a batch size that needs padding to fill the 128-lane packing
    alpha2 = jax.random.normal(k_alpha2, (10, C), dtype=jnp.float32)
    y2, sg2, s2 = gumbel_softmax_forward(alpha2, k_noise, temp=0.7, hard=True)

    jax.block_until_ready((y_soft, sg_soft, s_soft, y_hard, sg_hard, s_hard, y2, sg2, s2))

    # light sanity checks
    assert y_soft.shape == (B, C) and sg_soft.shape == (B, C) and s_soft.shape == (B, C)
    assert jnp.allclose(jnp.sum(s_soft, axis=-1), 1.0, atol=1e-2)
    assert jnp.allclose(jnp.sum(sg_soft, axis=-1), 1.0, atol=1e-2)
    assert jnp.allclose(y_soft, sg_soft)                               # hard=False: y == sg
    assert jnp.allclose(jnp.sum(y_hard, axis=-1), 1.0, atol=1e-6)      # one-hot rows
    assert bool(jnp.all(jnp.max(y_hard, axis=-1) > 0.99))
    # same noise key -> the hard argmax must agree with the soft sample's argmax
    assert bool(jnp.all(jnp.argmax(y_hard, axis=-1) == jnp.argmax(sg_soft, axis=-1)))
    assert y2.shape == (10, C)
    assert jnp.allclose(jnp.sum(y2, axis=-1), 1.0, atol=1e-6)
    assert jnp.allclose(jnp.sum(s2, axis=-1), 1.0, atol=1e-2)

    print("KERNEL_OK")
</pallas_src>

<mosaic_0001>
module attributes {stable_mosaic.version = 11 : i64} {
  func.func @_gumbel_softmax_kernel(%arg0: i32, %arg1: memref<1x128xf32, #tpu.memory_space<vmem>>, %arg2: memref<1x128xf32, #tpu.memory_space<vmem>>, %arg3: memref<1x128xf32, #tpu.memory_space<vmem>>, %arg4: memref<1x128xf32, #tpu.memory_space<vmem>>) attributes {dimension_semantics = [#tpu.dimension_semantics<arbitrary>], iteration_bounds = array<i64: 1>, scalar_prefetch = 0 : i64, scratch_operands = 0 : i64, tpu.core_type = #tpu.core_type<tc>, window_params = [{transform_indices = @transform_0, window_bounds = array<i64: 1, 128>}, {transform_indices = @transform_1, window_bounds = array<i64: 1, 128>}, {transform_indices = @transform_2, window_bounds = array<i64: 1, 128>}, {transform_indices = @transform_3, window_bounds = array<i64: 1, 128>}]} {
    %c0 = arith.constant 0 : index
    %c0_0 = arith.constant 0 : index
    %0 = vector.load %arg1[%c0, %c0_0] : memref<1x128xf32, #tpu.memory_space<vmem>>, vector<1x128xf32>
    %c0_1 = arith.constant 0 : index
    %c0_2 = arith.constant 0 : index
    %1 = vector.load %arg2[%c0_1, %c0_2] : memref<1x128xf32, #tpu.memory_space<vmem>>, vector<1x128xf32>
    %cst = arith.constant 1.000000e-10 : f32
    %2 = vector.broadcast %cst : f32 to vector<1x128xf32>
    %3 = arith.addf %1, %2 : vector<1x128xf32>
    %4 = math.log %3 : vector<1x128xf32>
    %cst_3 = arith.constant 1.000000e-10 : f32
    %5 = vector.broadcast %cst_3 : f32 to vector<1x128xf32>
    %6 = arith.subf %5, %4 : vector<1x128xf32>
    %7 = math.log %6 : vector<1x128xf32>
    %cst_4 = arith.constant 0.000000e+00 : f32
    %8 = vector.broadcast %cst_4 : f32 to vector<1x128xf32>
    %9 = arith.subf %8, %7 : vector<1x128xf32>
    %10 = arith.addf %0, %9 : vector<1x128xf32>
    %cst_5 = arith.constant 1.000000e+00 : f32
    %11 = vector.broadcast %cst_5 : f32 to vector<1x128xf32>
    %12 = arith.mulf %10, %11 : vector<1x128xf32>
    %13 = vector.shape_cast %12 : vector<1x128xf32> to vector<1x8x16xf32>
    %cst_6 = arith.constant dense<0xFF800000> : vector<1x8xf32>
    %14 = vector.multi_reduction <maximumf>, %13, %cst_6 [2] : vector<1x8x16xf32> to vector<1x8xf32>
    %15 = vector.shape_cast %14 : vector<1x8xf32> to vector<1x8x1xf32>
    %16 = vector.shape_cast %15 : vector<1x8x1xf32> to vector<1x8x1xf32>
    %17 = vector.broadcast %16 : vector<1x8x1xf32> to vector<1x8x16xf32>
    %18 = vector.shape_cast %17 : vector<1x8x16xf32> to vector<1x128xf32>
    %19 = arith.subf %12, %18 : vector<1x128xf32>
    %20 = math.exp %19 : vector<1x128xf32>
    %21 = vector.shape_cast %20 : vector<1x128xf32> to vector<1x8x16xf32>
    %cst_7 = arith.constant dense<0.000000e+00> : vector<1x8xf32>
    %22 = vector.multi_reduction <add>, %21, %cst_7 [2] : vector<1x8x16xf32> to vector<1x8xf32>
    %23 = vector.shape_cast %22 : vector<1x8xf32> to vector<1x8x1xf32>
    %24 = vector.shape_cast %23 : vector<1x8x1xf32> to vector<1x8x1xf32>
    %25 = vector.broadcast %24 : vector<1x8x1xf32> to vector<1x8x16xf32>
    %26 = vector.shape_cast %25 : vector<1x8x16xf32> to vector<1x128xf32>
    %cst_8 = arith.constant 1.000000e+00 : f32
    %27 = vector.broadcast %cst_8 : f32 to vector<1x128xf32>
    %28 = arith.divf %27, %26 : vector<1x128xf32>
    %29 = arith.mulf %20, %28 : vector<1x128xf32>
    %cst_9 = arith.constant 1.000000e-10 : f32
    %30 = vector.broadcast %cst_9 : f32 to vector<1x128xf32>
    %31 = arith.maximumf %29, %30 : vector<1x128xf32>
    %32 = vector.shape_cast %0 : vector<1x128xf32> to vector<1x8x16xf32>
    %cst_10 = arith.constant dense<0xFF800000> : vector<1x8xf32>
    %33 = vector.multi_reduction <maximumf>, %32, %cst_10 [2] : vector<1x8x16xf32> to vector<1x8xf32>
    %34 = vector.shape_cast %33 : vector<1x8xf32> to vector<1x8x1xf32>
    %35 = vector.shape_cast %34 : vector<1x8x1xf32> to vector<1x8x1xf32>
    %36 = vector.broadcast %35 : vector<1x8x1xf32> to vector<1x8x16xf32>
    %37 = vector.shape_cast %36 : vector<1x8x16xf32> to vector<1x128xf32>
    %38 = arith.subf %0, %37 : vector<1x128xf32>
    %39 = math.exp %38 : vector<1x128xf32>
    %40 = vector.shape_cast %39 : vector<1x128xf32> to vector<1x8x16xf32>
    %cst_11 = arith.constant dense<0.000000e+00> : vector<1x8xf32>
    %41 = vector.multi_reduction <add>, %40, %cst_11 [2] : vector<1x8x16xf32> to vector<1x8xf32>
    %42 = vector.shape_cast %41 : vector<1x8xf32> to vector<1x8x1xf32>
    %43 = vector.shape_cast %42 : vector<1x8x1xf32> to vector<1x8x1xf32>
    %44 = vector.broadcast %43 : vector<1x8x1xf32> to vector<1x8x16xf32>
    %45 = vector.shape_cast %44 : vector<1x8x16xf32> to vector<1x128xf32>
    %cst_12 = arith.constant 1.000000e+00 : f32
    %46 = vector.broadcast %cst_12 : f32 to vector<1x128xf32>
    %47 = arith.divf %46, %45 : vector<1x128xf32>
    %48 = arith.mulf %39, %47 : vector<1x128xf32>
    %c0_13 = arith.constant 0 : index
    %c0_14 = arith.constant 0 : index
    %49 = vector.load %arg3[%c0_13, %c0_14] : memref<1x128xf32, #tpu.memory_space<vmem>>, vector<1x128xf32>
    tpu.vector_store %arg3[%c0_13, %c0_14], %31 {strides = array<i32>} : memref<1x128xf32, #tpu.memory_space<vmem>>, vector<1x128xf32>,
    %c0_15 = arith.constant 0 : index
    %c0_16 = arith.constant 0 : index
    %50 = vector.load %arg4[%c0_15, %c0_16] : memref<1x128xf32, #tpu.memory_space<vmem>>, vector<1x128xf32>
    tpu.vector_store %arg4[%c0_15, %c0_16], %48 {strides = array<i32>} : memref<1x128xf32, #tpu.memory_space<vmem>>, vector<1x128xf32>,
    return
  }
  func.func @transform_0(%arg0: i32) -> (i32, i32) {
    %c0_i32 = arith.constant 0 : i32
    %c0_i32_0 = arith.constant 0 : i32
    return %arg0, %c0_i32 : i32, i32
  }
  func.func @transform_1(%arg0: i32) -> (i32, i32) {
    %c0_i32 = arith.constant 0 : i32
    %c0_i32_0 = arith.constant 0 : i32
    return %arg0, %c0_i32 : i32, i32
  }
  func.func @transform_2(%arg0: i32) -> (i32, i32) {
    %c0_i32 = arith.constant 0 : i32
    %c0_i32_0 = arith.constant 0 : i32
    return %arg0, %c0_i32 : i32, i32
  }
  func.func @transform_3(%arg0: i32) -> (i32, i32) {
    %c0_i32 = arith.constant 0 : i32
    %c0_i32_0 = arith.constant 0 : i32
    return %arg0, %c0_i32 : i32, i32
  }
}

</mosaic_0001>

<bundles_post_ra>
// kernel: tpu_custom_call.1
= control target key start
LH: loop header
LB: loop body
LE: loop exit
PB: predicated region body
PF: predicated region fallthrough
CT: control target
= control target key end

     0   :  { %9 = vsyncpa [#allocation3], 0  ;;  %s1090_s0 = inlined_call_operand.hbm [shape: f32[1,128], index: 0, kind: input, shape index: {}]   ;;  %s1091_s1 = inlined_call_operand.vmem [shape: f32[1,128], index: 1, kind: input, shape index: {}]   ;;  %s1092_s2 = inlined_call_operand.hbm [shape: f32[1,128], index: 2, kind: output, shape index: {0}]   ;;  %s1093_s3 = inlined_call_operand.hbm [shape: f32[1,128], index: 3, kind: output, shape index: {1}]  }
   0x1   :  { %10 = vsyncpa [#allocation4], 0 }
   0x2   :  { %11 = vsyncpa [#allocation7], 0  ;;  %s794_s12 = smov [#allocation2]   ;;  %s722_s16 = scalar_lea.hbm %s1090_s0, 16 }
   0x3   :  { %s18_s13 = sshll.u32 %s794_s12, 4  ;;  %p723_p0 = scmp.ne.s32.totalorder %s1090_s0, %s722_s16  ;;  %s19_s13 = int_to_ptr.vmem [resolvable:$true] %s18_s13 }
   0x4   :  { %p726_p1 = scmp.lt.u32.totalorder %s722_s16, %s1090_s0 }
   0x6   :  { %p728_p2 = pnand %p726_p1, %p723_p0 }
   0x8   :  { %731 = shalt.err (!%p728_p2)
}
   0x9   :  { %s732_s21 = scalar_lea.vmem %s19_s13, 16  ;;  %s736_s22 = scalar_lea.vmem %s19_s13, 32 }
   0xa   :  { %p733_p3 = scmp.ne.s32.totalorder %s19_s13, %s732_s21  ;;  %p737_p4 = scmp.lt.s32.totalorder %s19_s13, %s19_s13 }
   0xb   :  { %p738_p5 = scmp.lt.s32.totalorder %s736_s22, %s732_s21 }
   0xd   :  { %p739_p6 = por %p738_p5, %p737_p4 }
   0xf   :  { %p740_p7 = pnand %p739_p6, %p733_p3 }
  0x11   :  { %743 = shalt.err (!%p740_p7)
}
  0x12   :  { %21 = dma.hbm_to_vmem [thread:$0]  %s1090_s0, 16, %s19_s13, [#allocation3]  }
  0x13   :  { %788 = dma.done.wait [#allocation3], 16  }
  0x14   :  { %789 = vsyncadd [#allocation3], 4294967280  ;;  %v840_v0 = vld [vmem:[#allocation2] sm:$0x1]  ;;  %s795_s27 = smov 112   ;;  %s796_s28 = smov 96   ;;  %v59_v19 = vlaneseq }
  0x15   :  { %v28_v1 = vld [vmem:[%s1091_s1] sm:$0x1]  ;;  %356 = vrot.lane.b32.xlu1 %v840_v0, %s795_s27  ;;  %358 = vrot.lane.b32.xlu0 %v840_v0, %s796_s28  ;;  %s797_s29 = smov 80   ;;  %s798_s0 = smov 64   ;;  %v802_v17 = vmov 1966171168  }
  0x16   :  { %v29_v2 = vadd.f32 1e-10, %v28_v1  ;;  %s799_s30 = smov 48   ;;  %s800_s1 = smov 32   ;;  %v57_v18 = vunpack.c.l.s4 %v802_v17  ;;  %v60_v23 = vshrl.u32 %v59_v19, 7  ;;  %vm102_vm0 = vcmask 130048  }
  0x17   :  { %s801_s4 = smov 16   ;;  %v803_v58 = vmov 1983009808   ;;  %v804_v60 = vmov 1934713408   ;;  %vm184_vm1 = vcmask 261120  }
  0x18   :  { %710 = vlog2.f32 %v29_v2  ;;  %v58_v22 = vunpack.c.0.s8 %v57_v18  ;;  %v108_v59 = vunpack.c.l.s4 %v803_v58  ;;  %v123_v61 = vunpack.c.l.s4 %v804_v60  ;;  %s806_s5 = smov [#allocation5]   ;;  %s807_s7 = smov [#allocation6]  }
  0x19   :  { %360 = vrot.lane.b32.xlu1 %v840_v0, %s797_s29  ;;  %362 = vrot.lane.b32.xlu0 %v840_v0, %s798_s0  ;;  %vm186_vm2 = vcmask 392192   ;;  %vm188_vm3 = vcmask 523264   ;;  %vm190_vm4 = vcmask 654336   ;;  %vm192_vm5 = vcmask 785408   ;;  %s673_s6 = sshll.u32 %s806_s5, 4  ;;  %s683_s8 = sshll.u32 %s807_s7, 4  ;;  %s674_s6 = int_to_ptr.vmem [resolvable:$true] %s673_s6  ;;  %s1058_s8 = int_to_ptr.vmem [resolvable:$true] %s683_s8 }
  0x1a   :  { %v876_v27 = vsub.s32 %v58_v22, %v60_v23  ;;  %v109_v62 = vunpack.c.0.s8 %v108_v59  ;;  %v124_v63 = vunpack.c.0.s8 %v123_v61  ;;  %vm194_vm6 = vcmask 916480   ;;  %s744_s9 = scalar_lea.vmem %s674_s6, 16  ;;  %s748_s10 = scalar_lea.vmem %s674_s6, 32 }
  0x1b   :  { %p745_p8 = scmp.ne.s32.totalorder %s674_s6, %s744_s9  ;;  %p749_p9 = scmp.lt.s32.totalorder %s674_s6, %s674_s6 }
  0x1c   :  { %v894_v1 = vsub.s32 %v109_v62, %v60_v23  ;;  %v896_v2 = vsub.s32 %v124_v63, %v60_v23  ;;  %p750_p10 = scmp.lt.s32.totalorder %s748_s10, %s744_s9 }
  0x1d   :  { %364 = vrot.lane.b32.xlu1 %v840_v0, %s799_s30 }
  0x1e   :  { %p751_p11 = por %p750_p10, %p749_p9 }
  0x20   :  { %p752_p12 = pnand %p751_p11, %p745_p8 }
  0x22   :  { %v711_v3 = vpop.eup %710 }
  0x23   :  { %v31_v4 = vmul.f32 0.6931472, %v711_v3 }
  0x25   :  { %v32_v5 = vsub.f32 1e-10, %v31_v4 }
  0x27   :  { %712 = vlog2.f32 %v32_v5  ;;  %v805_v5 = vmov 0.0  }
  0x31   :  { %v713_v6 = vpop.eup %712 }
  0x32   :  { %v34_v7 = vmul.f32 0.6931472, %v713_v6 }
  0x34   :  { %v35_v8 = vsub.f32 0.0, %v34_v7 }
  0x36   :  { %v856_v9 = vadd.f32 %v35_v8, %v840_v0 }
  0x38   :  { %38 = vrot.lane.b32.xlu0 %v856_v9, %s795_s27  ;;  %42 = vrot.lane.b32.xlu1 %v856_v9, %s797_s29 }
  0x3c   :  { %40 = vrot.lane.b32.xlu0 %v856_v9, %s796_s28  ;;  %44 = vrot.lane.b32.xlu1 %v856_v9, %s798_s0 }
  0x40   :  { %46 = vrot.lane.b32.xlu0 %v856_v9, %s799_s30  ;;  %48 = vrot.lane.b32.xlu1 %v856_v9, %s800_s1 }
  0x44   :  { %50 = vrot.lane.b32.xlu0 %v856_v9, %s801_s4  ;;  %368 = vrot.lane.b32.xlu1 %v840_v0, %s801_s4 }
  0x48   :  { %366 = vrot.lane.b32.xlu0 %v840_v0, %s800_s1 }
  0x87   :  { %v357_v10 = vpop.permute.xlu1 %356  ;;  %v359_v11 = vpop.permute.xlu0 %358 }
  0x88   :  { %v370_v29 = vcombine.low %v840_v0, %v357_v10 }
  0x8a   :  { %v380_v36 = vrot.slane %v370_v29, %v876_v27 }
  0x8b   :  { %v361_v12 = vpop.permute.xlu1 %360  ;;  %v363_v13 = vpop.permute.xlu0 %362 }
  0x8c   :  { %v371_v30 = vcombine.low %v359_v11, %v361_v12 }
  0x8e   :  { %v387_v37 = vrot.slane %v371_v30, %v876_v27 }
  0x8f   :  { %v365_v14 = vpop.permute.xlu1 %364 }
  0x90   :  { %v372_v39 = vcombine.low %v363_v13, %v365_v14  ;;  %v402_v46 = vcombine.low %v380_v36, %v387_v37 }
  0x92   :  { %v394_v47 = vrot.slane %v372_v39, %v876_v27  ;;  %v410_v54 = vrot.slane %v402_v46, %v876_v27 }
  0xaa   :  { %v39_v15 = vpop.permute.xlu0 %38  ;;  %v43_v16 = vpop.permute.xlu1 %42 }
  0xab   :  { %v52_v28 = vcombine.low %v856_v9, %v39_v15 }
  0xad   :  { %v62_v34 = vrot.slane %v52_v28, %v876_v27 }
  0xae   :  { %v41_v20 = vpop.permute.xlu0 %40  ;;  %v45_v21 = vpop.permute.xlu1 %44 }
  0xaf   :  { %v53_v24 = vcombine.low %v41_v20, %v43_v16 }
  0xb1   :  { %v69_v31 = vrot.slane %v53_v24, %v876_v27 }
  0xb2   :  { %v47_v25 = vpop.permute.xlu0 %46  ;;  %v49_v26 = vpop.permute.xlu1 %48 }
  0xb3   :  { %v54_v32 = vcombine.low %v45_v21, %v47_v25  ;;  %v84_v40 = vcombine.low %v62_v34, %v69_v31 }
  0xb5   :  { %v76_v41 = vrot.slane %v54_v32, %v876_v27  ;;  %v92_v49 = vrot.slane %v84_v40, %v876_v27 }
  0xb6   :  { %v51_v33 = vpop.permute.xlu0 %50  ;;  %v369_v38 = vpop.permute.xlu1 %368 }
  0xb7   :  { %v55_v35 = vcombine.low %v49_v26, %v51_v33 }
  0xb9   :  { %v83_v42 = vrot.slane %v55_v35, %v876_v27 }
  0xba   :  { %v367_v43 = vpop.permute.xlu0 %366 }
  0xbb   :  { %v85_v44 = vcombine.low %v76_v41, %v83_v42  ;;  %v373_v45 = vcombine.low %v367_v43, %v369_v38 }
  0xbd   :  { %v401_v48 = vrot.slane %v373_v45, %v876_v27  ;;  %v99_v50 = vrot.slane %v85_v44, %v876_v27 }
  0xbf   :  { %v403_v51 = vcombine.low %v394_v47, %v401_v48  ;;  %v100_v52 = vcombine.low %v92_v49, %v99_v50 }
  0xc1   :  { %v103_v53 = vsel %vm102_vm0, %v100_v52, -inf  ;;  %v417_v55 = vrot.slane %v403_v51, %v876_v27 }
  0xc2   :  { %104 = vmax.xlane.f32.xlu0 %v103_v53 }
  0xc3   :  { %v418_v56 = vcombine.low %v410_v54, %v417_v55 }
  0xc5   :  { %v420_v57 = vsel %vm102_vm0, %v418_v56, -inf }
  0xc6   :  { %421 = vmax.xlane.f32.xlu1 %v420_v57 }
 0x14f   :  { %v105_v3 = vpop.xlane.xlu0 %104 }
 0x150   :  { %v113_v4 = vrot.slane %v105_v3, %v894_v1  ;;  %v106_v6 = vcombine.high %v105_v3, %v805_v5 }
 0x152   :  { %v128_v7 = vrot.slane %v113_v4, %v896_v2  ;;  %v120_v11 = vrot.slane %v106_v6, %v894_v1  ;;  %v121_v12 = vcombine.high %v113_v4, %v805_v5 }
 0x153   :  { %v422_v8 = vpop.xlane.xlu1 %421 }
 0x154   :  { %v430_v10 = vrot.slane %v422_v8, %v894_v1  ;;  %v151_v13 = vcombine.high %v128_v7, %v805_v5  ;;  %v423_v15 = vcombine.high %v422_v8, %v805_v5  ;;  %v135_v18 = vrot.slane %v121_v12, %v896_v2 }
 0x155   :  { %v143_v19 = vrot.slane %v120_v11, %v896_v2  ;;  %v136_v24 = vcombine.high %v120_v11, %v805_v5 }
 0x156   :  { %v445_v14 = vrot.slane %v430_v10, %v896_v2  ;;  %156 = vrot.lane.b32.xlu0 %v151_v13, %s801_s4  ;;  %v438_v16 = vcombine.high %v430_v10, %v805_v5  ;;  %v437_v20 = vrot.slane %v423_v15, %v894_v1  ;;  %v152_v22 = vcombine.high %v135_v18, %v805_v5 }
 0x157   :  { %v153_v25 = vcombine.high %v143_v19, %v805_v5  ;;  %v150_v28 = vrot.slane %v136_v24, %v896_v2 }
 0x158   :  { %v468_v17 = vcombine.high %v445_v14, %v805_v5  ;;  %v452_v21 = vrot.slane %v438_v16, %v896_v2  ;;  %v460_v23 = vrot.slane %v437_v20, %v896_v2  ;;  %v453_v29 = vcombine.high %v437_v20, %v805_v5 }
 0x159   :  { %v154_v30 = vcombine.high %v150_v28, %v805_v5 }
 0x15a   :  { %473 = vrot.lane.b32.xlu1 %v468_v17, %s801_s4  ;;  %168 = vrot.lane.b32.xlu0 %v143_v19, %s798_s0  ;;  %v469_v26 = vcombine.high %v452_v21, %v805_v5  ;;  %v470_v31 = vcombine.high %v460_v23, %v805_v5  ;;  %v467_v32 = vrot.slane %v453_v29, %v896_v2 }
 0x15c   :  { %v471_v33 = vcombine.high %v467_v32, %v805_v5 }
 0x15e   :  { %477 = vrot.lane.b32.xlu1 %v452_v21, %s800_s1  ;;  %164 = vrot.lane.b32.xlu0 %v152_v22, %s799_s30 }
 0x162   :  { %485 = vrot.lane.b32.xlu1 %v460_v23, %s798_s0  ;;  %172 = vrot.lane.b32.xlu0 %v153_v25, %s797_s29 }
 0x166   :  { %481 = vrot.lane.b32.xlu1 %v469_v26, %s799_s30  ;;  %176 = vrot.lane.b32.xlu0 %v150_v28, %s796_s28 }
 0x16a   :  { %160 = vrot.lane.b32.xlu1 %v135_v18, %s800_s1  ;;  %180 = vrot.lane.b32.xlu0 %v154_v30, %s795_s27 }
 0x16e   :  { %489 = vrot.lane.b32.xlu1 %v470_v31, %s797_s29  ;;  %493 = vrot.lane.b32.xlu0 %v467_v32, %s796_s28 }
 0x172   :  { %497 = vrot.lane.b32.xlu1 %v471_v33, %s795_s27 }
 0x1c8   :  { %v157_v34 = vpop.permute.xlu0 %156 }
 0x1c9   :  { %v183_v44 = vsel %vm102_vm0, %v128_v7, %v157_v34 }
 0x1cc   :  { %v474_v35 = vpop.permute.xlu1 %473  ;;  %v169_v36 = vpop.permute.xlu0 %168 }
 0x1cd   :  { %v500_v43 = vsel %vm102_vm0, %v445_v14, %v474_v35 }
 0x1d0   :  { %v478_v37 = vpop.permute.xlu1 %477  ;;  %v165_v38 = vpop.permute.xlu0 %164 }
 0x1d1   :  { %v501_v45 = vsel %vm184_vm1, %v500_v43, %v478_v37 }
 0x1d4   :  { %v486_v39 = vpop.permute.xlu1 %485  ;;  %v173_v40 = vpop.permute.xlu0 %172 }
 0x1d8   :  { %v482_v41 = vpop.permute.xlu1 %481  ;;  %v177_v42 = vpop.permute.xlu0 %176 }
 0x1d9   :  { %v502_v47 = vsel %vm186_vm2, %v501_v45, %v482_v41 }
 0x1da   :  { %v503_v52 = vsel %vm188_vm3, %v502_v47, %v486_v39 }
 0x1dc   :  { %v161_v46 = vpop.permute.xlu1 %160  ;;  %v181_v49 = vpop.permute.xlu0 %180 }
 0x1dd   :  { %v185_v48 = vsel %vm184_vm1, %v183_v44, %v161_v46 }
 0x1de   :  { %v187_v50 = vsel %vm186_vm2, %v185_v48, %v165_v38 }
 0x1df   :  { %v189_v51 = vsel %vm188_vm3, %v187_v50, %v169_v36 }
 0x1e0   :  { %v490_v53 = vpop.permute.xlu1 %489  ;;  %v191_v54 = vsel %vm190_vm4, %v189_v51, %v173_v40  ;;  %v494_v56 = vpop.permute.xlu0 %493 }
 0x1e1   :  { %v504_v55 = vsel %vm190_vm4, %v503_v52, %v490_v53  ;;  %v193_v57 = vsel %vm192_vm5, %v191_v54, %v177_v42 }
 0x1e2   :  { %v505_v58 = vsel %vm192_vm5, %v504_v55, %v494_v56  ;;  %v195_v62 = vsel %vm194_vm6, %v193_v57, %v181_v49 }
 0x1e3   :  { %v196_v3 = vsub.f32 %v856_v9, %v195_v62 }
 0x1e4   :  { %v498_v59 = vpop.permute.xlu1 %497 }
 0x1e5   :  { %v506_v60 = vsel %vm194_vm6, %v505_v58, %v498_v59  ;;  %v197_v4 = vmul.f32 1.442695, %v196_v3 }
 0x1e6   :  { %v507_v61 = vsub.f32 %v840_v0, %v506_v60 }
 0x1e8   :  { %v508_v63 = vmul.f32 1.442695, %v507_v61 }
 0x1ea   :  { %714 = vpow2.f32 %v508_v63 }
 0x1eb   :  { %716 = vpow2.f32 %v197_v4 }
 0x1f4   :  { %v954_v6 = vpop.eup %714 }
 0x1f5   :  { %513 = vrot.lane.b32.xlu0 %v954_v6, %s796_s28  ;;  %511 = vrot.lane.b32.xlu1 %v954_v6, %s795_s27  ;;  %v964_v0 = vpop.eup %716 }
 0x1f9   :  { %517 = vrot.lane.b32.xlu0 %v954_v6, %s798_s0  ;;  %515 = vrot.lane.b32.xlu1 %v954_v6, %s797_s29 }
 0x1fd   :  { %200 = vrot.lane.b32.xlu0 %v964_v0, %s795_s27  ;;  %519 = vrot.lane.b32.xlu1 %v954_v6, %s799_s30 }
 0x201   :  { %204 = vrot.lane.b32.xlu0 %v964_v0, %s797_s29  ;;  %202 = vrot.lane.b32.xlu1 %v964_v0, %s796_s28 }
 0x205   :  { %208 = vrot.lane.b32.xlu0 %v964_v0, %s799_s30  ;;  %206 = vrot.lane.b32.xlu1 %v964_v0, %s798_s0 }
 0x209   :  { %212 = vrot.lane.b32.xlu0 %v964_v0, %s801_s4  ;;  %210 = vrot.lane.b32.xlu1 %v964_v0, %s800_s1 }
 0x20d   :  { %521 = vrot.lane.b32.xlu0 %v954_v6, %s800_s1  ;;  %523 = vrot.lane.b32.xlu1 %v954_v6, %s801_s4 }
 0x267   :  { %v514_v9 = vpop.permute.xlu0 %513  ;;  %v512_v7 = vpop.permute.xlu1 %511 }
 0x268   :  { %v525_v22 = vcombine.low %v954_v6, %v512_v7 }
 0x26a   :  { %v535_v33 = vrot.slane %v525_v22, %v876_v27 }
 0x26b   :  { %v518_v8 = vpop.permute.xlu0 %517  ;;  %v516_v10 = vpop.permute.xlu1 %515 }
 0x26c   :  { %v526_v19 = vcombine.low %v514_v9, %v516_v10 }
 0x26e   :  { %v542_v28 = vrot.slane %v526_v19, %v876_v27 }
 0x26f   :  { %v201_v11 = vpop.permute.xlu0 %200  ;;  %v520_v12 = vpop.permute.xlu1 %519 }
 0x270   :  { %v214_v18 = vcombine.low %v964_v0, %v201_v11  ;;  %v527_v29 = vcombine.low %v518_v8, %v520_v12  ;;  %v557_v38 = vcombine.low %v535_v33, %v542_v28 }
 0x272   :  { %v224_v25 = vrot.slane %v214_v18, %v876_v27  ;;  %v549_v39 = vrot.slane %v527_v29, %v876_v27  ;;  %v565_v46 = vrot.slane %v557_v38, %v876_v27 }
 0x273   :  { %v205_v13 = vpop.permute.xlu0 %204  ;;  %v203_v14 = vpop.permute.xlu1 %202 }
 0x274   :  { %v215_v15 = vcombine.low %v203_v14, %v205_v13 }
 0x276   :  { %v231_v20 = vrot.slane %v215_v15, %v876_v27 }
 0x277   :  { %v209_v16 = vpop.permute.xlu0 %208  ;;  %v207_v17 = vpop.permute.xlu1 %206 }
 0x278   :  { %v216_v21 = vcombine.low %v207_v17, %v209_v16  ;;  %v246_v30 = vcombine.low %v224_v25, %v231_v20 }
 0x27a   :  { %v238_v31 = vrot.slane %v216_v21, %v876_v27  ;;  %v254_v41 = vrot.slane %v246_v30, %v876_v27 }
 0x27b   :  { %v213_v23 = vpop.permute.xlu0 %212  ;;  %v211_v24 = vpop.permute.xlu1 %210 }
 0x27c   :  { %v217_v26 = vcombine.low %v211_v24, %v213_v23 }
 0x27e   :  { %v245_v32 = vrot.slane %v217_v26, %v876_v27 }
 0x27f   :  { %v522_v34 = vpop.permute.xlu0 %521  ;;  %v524_v35 = vpop.permute.xlu1 %523 }
 0x280   :  { %v247_v36 = vcombine.low %v238_v31, %v245_v32  ;;  %v528_v37 = vcombine.low %v522_v34, %v524_v35 }
 0x282   :  { %v556_v40 = vrot.slane %v528_v37, %v876_v27  ;;  %v261_v42 = vrot.slane %v247_v36, %v876_v27 }
 0x284   :  { %v558_v43 = vcombine.low %v549_v39, %v556_v40  ;;  %v262_v44 = vcombine.low %v254_v41, %v261_v42 }
 0x286   :  { %v264_v45 = vsel %vm102_vm0, %v262_v44, 0.0  ;;  %v572_v47 = vrot.slane %v558_v43, %v876_v27 }
 0x287   :  { %265 = vadd.xlane.f32.xlu0 %v264_v45 }
 0x288   :  { %v573_v48 = vcombine.low %v565_v46, %v572_v47 }
 0x28a   :  { %v575_v49 = vsel %vm102_vm0, %v573_v48, 0.0 }
 0x28b   :  { %576 = vadd.xlane.f32.xlu1 %v575_v49 }
 0x314   :  { %v266_v50 = vpop.xlane.xlu0 %265 }
 0x315   :  { %v274_v51 = vrot.slane %v266_v50, %v894_v1  ;;  %v267_v52 = vcombine.high %v266_v50, %v805_v5 }
 0x317   :  { %v289_v53 = vrot.slane %v274_v51, %v896_v2  ;;  %v281_v56 = vrot.slane %v267_v52, %v894_v1  ;;  %v282_v57 = vcombine.high %v274_v51, %v805_v5 }
 0x318   :  { %v577_v54 = vpop.xlane.xlu1 %576 }
 0x319   :  { %v585_v55 = vrot.slane %v577_v54, %v894_v1  ;;  %v312_v27 = vcombine.high %v289_v53, %v805_v5  ;;  %v578_v59 = vcombine.high %v577_v54, %v805_v5  ;;  %v296_v62 = vrot.slane %v282_v57, %v896_v2 }
 0x31a   :  { %v304_v63 = vrot.slane %v281_v56, %v896_v2  ;;  %v297_v8 = vcombine.high %v281_v56, %v805_v5 }
 0x31b   :  { %v600_v58 = vrot.slane %v585_v55, %v896_v2  ;;  %317 = vrot.lane.b32.xlu0 %v312_v27, %s801_s4  ;;  %v593_v60 = vcombine.high %v585_v55, %v805_v5  ;;  %v592_v3 = vrot.slane %v578_v59, %v894_v1  ;;  %v313_v9 = vcombine.high %v296_v62, %v805_v5 }
 0x31c   :  { %v314_v10 = vcombine.high %v304_v63, %v805_v5  ;;  %v311_v11 = vrot.slane %v297_v8, %v896_v2 }
 0x31d   :  { %v623_v61 = vcombine.high %v600_v58, %v805_v5  ;;  %v607_v4 = vrot.slane %v593_v60, %v896_v2  ;;  %v615_v7 = vrot.slane %v592_v3, %v896_v2  ;;  %v608_v12 = vcombine.high %v592_v3, %v805_v5 }
 0x31e   :  { %v315_v13 = vcombine.high %v311_v11, %v805_v5 }
 0x31f   :  { %628 = vrot.lane.b32.xlu1 %v623_v61, %s801_s4  ;;  %329 = vrot.lane.b32.xlu0 %v304_v63, %s798_s0  ;;  %v624_v1 = vcombine.high %v607_v4, %v805_v5  ;;  %v625_v14 = vcombine.high %v615_v7, %v805_v5  ;;  %v622_v15 = vrot.slane %v608_v12, %v896_v2 }
 0x321   :  { %v626_v16 = vcombine.high %v622_v15, %v805_v5 }
 0x323   :  { %632 = vrot.lane.b32.xlu1 %v607_v4, %s800_s1  ;;  %325 = vrot.lane.b32.xlu0 %v313_v9, %s799_s30 }
 0x327   :  { %640 = vrot.lane.b32.xlu1 %v615_v7, %s798_s0  ;;  %333 = vrot.lane.b32.xlu0 %v314_v10, %s797_s29 }
 0x32b   :  { %636 = vrot.lane.b32.xlu1 %v624_v1, %s799_s30  ;;  %337 = vrot.lane.b32.xlu0 %v311_v11, %s796_s28 }
 0x32f   :  { %321 = vrot.lane.b32.xlu1 %v296_v62, %s800_s1  ;;  %341 = vrot.lane.b32.xlu0 %v315_v13, %s795_s27 }
 0x333   :  { %644 = vrot.lane.b32.xlu1 %v625_v14, %s797_s29  ;;  %648 = vrot.lane.b32.xlu0 %v622_v15, %s796_s28 }
 0x337   :  { %652 = vrot.lane.b32.xlu1 %v626_v16, %s795_s27 }
 0x38d   :  { %v318_v17 = vpop.permute.xlu0 %317 }
 0x38e   :  { %v344_v2 = vsel %vm102_vm0, %v289_v53, %v318_v17 }
 0x391   :  { %v629_v18 = vpop.permute.xlu1 %628  ;;  %v330_v19 = vpop.permute.xlu0 %329 }
 0x392   :  { %v655_v26 = vsel %vm102_vm0, %v600_v58, %v629_v18 }
 0x395   :  { %v633_v20 = vpop.permute.xlu1 %632  ;;  %v326_v21 = vpop.permute.xlu0 %325 }
 0x396   :  { %v656_v28 = vsel %vm184_vm1, %v655_v26, %v633_v20 }
 0x399   :  { %v641_v22 = vpop.permute.xlu1 %640  ;;  %v334_v23 = vpop.permute.xlu0 %333 }
 0x39d   :  { %v637_v24 = vpop.permute.xlu1 %636  ;;  %v338_v25 = vpop.permute.xlu0 %337 }
 0x39e   :  { %v657_v5 = vsel %vm186_vm2, %v656_v28, %v637_v24 }
 0x39f   :  { %v658_v35 = vsel %vm188_vm3, %v657_v5, %v641_v22 }
 0x3a1   :  { %v322_v29 = vpop.permute.xlu1 %321  ;;  %v342_v30 = vpop.permute.xlu0 %341 }
 0x3a2   :  { %v345_v31 = vsel %vm184_vm1, %v344_v2, %v322_v29 }
 0x3a3   :  { %v346_v32 = vsel %vm186_vm2, %v345_v31, %v326_v21 }
 0x3a4   :  { %v347_v33 = vsel %vm188_vm3, %v346_v32, %v330_v19 }
 0x3a5   :  { %v348_v34 = vsel %vm190_vm4, %v347_v33, %v334_v23  ;;  %v645_v36 = vpop.permute.xlu1 %644  ;;  %v649_v39 = vpop.permute.xlu0 %648 }
 0x3a6   :  { %v349_v37 = vsel %vm192_vm5, %v348_v34, %v338_v25  ;;  %v659_v38 = vsel %vm190_vm4, %v658_v35, %v645_v36 }
 0x3a7   :  { %v350_v40 = vsel %vm194_vm6, %v349_v37, %v342_v30  ;;  %v660_v41 = vsel %vm192_vm5, %v659_v38, %v649_v39 }
 0x3a8   :  { %718 = vrcp.f32 %v350_v40 }
 0x3a9   :  { %v653_v42 = vpop.permute.xlu1 %652 }
 0x3aa   :  { %v661_v43 = vsel %vm194_vm6, %v660_v41, %v653_v42 }
 0x3ab   :  { %720 = vrcp.f32 %v661_v43 }
 0x3b2   :  { %v719_v44 = vpop.eup %718 }
 0x3b3   :  { %v353_v45 = vmul.f32 %v719_v44, %v964_v0 }
 0x3b5   :  { %v721_v46 = vpop.eup %720  ;;  %v354_v47 = vmax.f32 %v353_v45, 1e-10 }
 0x3b6   :  { %v664_v48 = vmul.f32 %v721_v46, %v954_v6 }
 0x3b7   :  { %665 = vst [vmem:[#allocation5] sm:$0x1] %v354_v47 }
 0x3b8   :  { %755 = shalt.err (!%p752_p12)
}
 0x3b9   :  { %s756_s13 = scalar_lea.hbm %s1092_s2, 16 }
 0x3ba   :  { %p757_p13 = scmp.ne.s32.totalorder %s1092_s2, %s756_s13  ;;  %p760_p0 = scmp.lt.u32.totalorder %s756_s13, %s1092_s2 }
 0x3bc   :  { %p762_p1 = pnand %p760_p0, %p757_p13 }
 0x3be   :  { %765 = shalt.err (!%p762_p1)
}
 0x3bf   :  { %676 = dma.vmem_to_hbm [thread:$0]  %s674_s6, 16, %s1092_s2, [#allocation4]   ;;  %666 = vst [vmem:[#allocation6] sm:$0x1] %v664_v48 }
 0x3c0   :  { %s766_s20 = scalar_lea.vmem %s1058_s8, 16  ;;  %s770_s21 = scalar_lea.vmem %s1058_s8, 32 }
 0x3c1   :  { %p767_p2 = scmp.ne.s32.totalorder %s1058_s8, %s766_s20  ;;  %p771_p3 = scmp.lt.s32.totalorder %s1058_s8, %s1058_s8 }
 0x3c2   :  { %p772_p4 = scmp.lt.s32.totalorder %s770_s21, %s766_s20 }
 0x3c4   :  { %p773_p5 = por %p772_p4, %p771_p3 }
 0x3c6   :  { %p774_p6 = pnand %p773_p5, %p767_p2 }
 0x3c8   :  { %777 = shalt.err (!%p774_p6)
}
 0x3c9   :  { %s778_s24 = scalar_lea.hbm %s1093_s3, 16 }
 0x3ca   :  { %p779_p7 = scmp.ne.s32.totalorder %s1093_s3, %s778_s24  ;;  %p782_p8 = scmp.lt.u32.totalorder %s778_s24, %s1093_s3 }
 0x3cc   :  { %p784_p9 = pnand %p782_p8, %p779_p7 }
 0x3ce   :  { %787 = shalt.err (!%p784_p9)
}
 0x3cf   :  { %686 = dma.vmem_to_hbm [thread:$0]  %s1058_s8, 16, %s1093_s3, [#allocation7]  }
 0x3d0   :  { %790 = dma.done.wait [#allocation4], 16  }
 0x3d1   :  { %791 = vsyncadd [#allocation4], 4294967280 }
 0x3d2   :  { %792 = dma.done.wait [#allocation7], 16  }
 0x3d3   :  { %793 = vsyncadd [#allocation7], 4294967280 }
 0x3d4   :  { %693 = vsyncpa [#allocation3], 1 }
 0x3d5   :  { %694 = vsyncpa [#allocation4], 1 }
 0x3d6   :  { %695 = vsyncpa [#allocation7], 1 }

</bundles_post_ra>
